<compile_context>
chip_gen: v7x
topology: tpu7x:2x2x1
jax: 0.10.0
libtpu: 0.0.40
codegen_flags: <defaults>
</compile_context>

<pallas_src>
import jax
import jax.numpy as jnp
from jax.experimental import pallas as pl
from jax.experimental.pallas import tpu as pltpu

STATE_DIM = 16
ACTION_DIM = 4
HIDDEN_DIM = 32
NUM_LAYERS = 3
NUM_HEADS = 8
DIM_HEAD = 32
INNER_DIM = NUM_HEADS * DIM_HEAD  # 256
LN_EPS = 1e-5

MAX_BATCH_BLOCK = 512   # rows per grid step (sweepable); VMEM use is tiny at this size
HEAD_PAD = 8            # fused actor-mean(4) + critic(1) head, padded to 8 lanes


def actor_critic_kernel(state_ref, w1_ref, wfold_ref, rows_ref, out_ref):
    x = state_ref[...]                        # (BM, STATE_DIM)
    rows = rows_ref[...]                      # (8, HIDDEN): b1, ln_g, ln_b, bfold(8 lanes)
    b1 = rows[0:1, :]
    ln_g = rows[1:2, :]
    ln_b = rows[2:3, :]
    bfold = rows[3:4, :HEAD_PAD]              # (1, HEAD_PAD)

    # --- feature extractor: Linear -> ReLU -> LayerNorm --------------------
    h = jnp.dot(x, w1_ref[...], preferred_element_type=jnp.float32) + b1
    h = jnp.maximum(h, 0.0)
    mu = jnp.mean(h, axis=-1, keepdims=True)
    var = jnp.mean((h - mu) ** 2, axis=-1, keepdims=True)        # biased var (PyTorch LN)
    h = (h - mu) * jax.lax.rsqrt(var + LN_EPS) * ln_g + ln_b

    # --- residual FlashAttention blocks + actor/critic heads, folded -------
    # TODO(synk): with seq_len == 1 the softmax == 1 and q/k are inert, so the three
    # residual blocks and both heads are one precomputed affine map (see prepare_kernel_params).
    out_ref[...] = jnp.dot(h, wfold_ref[...], preferred_element_type=jnp.float32) + bfold


def _choose_block_rows(rows8):
    """Big blocks to amortize ~0.35us/step overhead, but >=2 grid steps (v7x: 2 TCs)."""
    if rows8 <= 16:
        return rows8
    half = (((rows8 + 1) // 2) + 7) // 8 * 8       # ceil(rows/2), 8-aligned
    return min(MAX_BATCH_BLOCK, half)


def actor_critic_forward(state, kp, *, block_rows=None):
    """state: (B, STATE_DIM) f32.  kp: dict from prepare_kernel_params."""
    B = state.shape[0]
    rows8 = ((B + 7) // 8) * 8
    if block_rows is None:
        block_rows = _choose_block_rows(rows8)
    Bp = ((rows8 + block_rows - 1) // block_rows) * block_rows
    if Bp != B:
        # pads at most block_rows-1 rows, and nothing at all for aligned batches
        state = jnp.pad(state, ((0, Bp - B), (0, 0)))

    out = pl.pallas_call(
        actor_critic_kernel,
        out_shape=jax.ShapeDtypeStruct((Bp, HEAD_PAD), jnp.float32),
        grid_spec=pltpu.PrefetchScalarGridSpec(
            num_scalar_prefetch=0,
            grid=(Bp // block_rows,),
            in_specs=[
                pl.BlockSpec((block_rows, STATE_DIM), lambda i: (i, 0)),
                pl.BlockSpec((STATE_DIM, HIDDEN_DIM), lambda i: (0, 0)),
                pl.BlockSpec((HIDDEN_DIM, HEAD_PAD), lambda i: (0, 0)),
                pl.BlockSpec((8, HIDDEN_DIM), lambda i: (0, 0)),
            ],
            out_specs=pl.BlockSpec((block_rows, HEAD_PAD), lambda i: (i, 0)),
        ),
        compiler_params=pltpu.CompilerParams(dimension_semantics=("parallel",)),
    )(state, kp["w1"], kp["wfold"], kp["rows"])

    mean = out[:B, :ACTION_DIM]
    value = out[:B, ACTION_DIM:ACTION_DIM + 1]
    std = jnp.exp(kp["log_std"])              # constant wrt batch: computed outside kernel
    return mean, std, value


def init_params(key):
    """Parameters in the original (PyTorch-equivalent) layout."""
    ks = jax.random.split(key, 8)

    def linear(k, fan_in, fan_out):
        kw, kb = jax.random.split(k)
        bound = 1.0 / (fan_in ** 0.5)
        w = jax.random.uniform(kw, (fan_in, fan_out), jnp.float32, -bound, bound)
        b = jax.random.uniform(kb, (1, fan_out), jnp.float32, -bound, bound)
        return w, b

    w1, b1 = linear(ks[0], STATE_DIM, HIDDEN_DIM)
    ln_g = jnp.ones((1, HIDDEN_DIM), jnp.float32)
    ln_b = jnp.zeros((1, HIDDEN_DIM), jnp.float32)

    wv_list, wo_list, bo_list = [], [], []
    layer_keys = jax.random.split(ks[1], NUM_LAYERS)
    for lk in layer_keys:
        kv, ko = jax.random.split(lk)
        bv = 1.0 / (HIDDEN_DIM ** 0.5)
        wv_list.append(jax.random.uniform(kv, (HIDDEN_DIM, INNER_DIM), jnp.float32, -bv, bv))
        wo, bo = linear(ko, INNER_DIM, HIDDEN_DIM)
        wo_list.append(wo)
        bo_list.append(bo)
    wv = jnp.stack(wv_list)                  # (L, H, INNER)
    wo = jnp.stack(wo_list)                  # (L, INNER, H)
    bo = jnp.stack(bo_list)                  # (L, 1, H)

    wa, ba = linear(ks[2], HIDDEN_DIM, ACTION_DIM)
    wc, bc = linear(ks[3], HIDDEN_DIM, 1)
    log_std = jnp.zeros((1, ACTION_DIM), jnp.float32)   # nn.Parameter(torch.zeros(1, A))

    return dict(w1=w1, b1=b1, ln_g=ln_g, ln_b=ln_b,
                wv=wv, wo=wo, bo=bo,
                wa=wa, ba=ba, log_std=log_std, wc=wc, bc=bc)


def prepare_kernel_params(p):
    """One-time host-side fold of PyTorch-layout params into the kernel layout."""
    eye = jnp.eye(HIDDEN_DIM, dtype=jnp.float32)

    # each FlashAttention block (seq_len==1): block(h) = h @ (I + wv@wo) + bo
    wres = jnp.einsum("lhi,lio->lho", p["wv"], p["wo"])          # (L, H, H)
    chain = eye
    bias_chain = jnp.zeros((1, HIDDEN_DIM), jnp.float32)
    for l in range(NUM_LAYERS):
        a = eye + wres[l]
        chain = chain @ a                                        # (I+R0)(I+R1)(I+R2)
        bias_chain = bias_chain @ a + p["bo"][l]                 # ((bo0(I+R1)+bo1)(I+R2)+bo2)

    # fused actor-mean / critic head, then folded through the residual chain
    whead = jnp.zeros((HIDDEN_DIM, HEAD_PAD), jnp.float32)
    whead = whead.at[:, :ACTION_DIM].set(p["wa"])
    whead = whead.at[:, ACTION_DIM:ACTION_DIM + 1].set(p["wc"])
    bhead = jnp.zeros((1, HEAD_PAD), jnp.float32)
    bhead = bhead.at[0, :ACTION_DIM].set(p["ba"][0])
    bhead = bhead.at[0, ACTION_DIM].set(p["bc"][0, 0])

    wfold = chain @ whead                                        # (H, HEAD_PAD)
    bfold = bias_chain @ whead + bhead                           # (1, HEAD_PAD)

    # pack all small per-feature rows into a single (8, H) tile (one DMA)
    rows = jnp.zeros((8, HIDDEN_DIM), jnp.float32)
    rows = rows.at[0].set(p["b1"][0])
    rows = rows.at[1].set(p["ln_g"][0])
    rows = rows.at[2].set(p["ln_b"][0])
    rows = rows.at[3, :HEAD_PAD].set(bfold[0])

    return dict(w1=p["w1"], wfold=wfold, rows=rows, log_std=p["log_std"])


def reference_forward(state, p):
    """Pure-JAX reference using the original (unfolded) parameters."""
    h = jnp.maximum(state @ p["w1"] + p["b1"], 0.0)
    mu = jnp.mean(h, axis=-1, keepdims=True)
    var = jnp.mean((h - mu) ** 2, axis=-1, keepdims=True)
    h = (h - mu) / jnp.sqrt(var + LN_EPS) * p["ln_g"] + p["ln_b"]
    for l in range(NUM_LAYERS):
        v = h @ p["wv"][l]
        h = h + (v @ p["wo"][l] + p["bo"][l])
    value = h @ p["wc"] + p["bc"]
    mean = h @ p["wa"] + p["ba"]
    std = jnp.exp(p["log_std"])
    return mean, std, value


if __name__ == "__main__":
    key = jax.random.PRNGKey(0)
    pkey, skey = jax.random.split(key)
    params = init_params(pkey)
    kparams = prepare_kernel_params(params)

    B = 256                                  # small: two 128-row grid blocks
    state = jax.random.normal(skey, (B, STATE_DIM), jnp.float32)

    mean, std, value = actor_critic_forward(state, kparams)
    jax.block_until_ready((mean, std, value))

    r_mean, r_std, r_value = reference_forward(state, params)
    assert mean.shape == (B, ACTION_DIM)
    assert std.shape == (1, ACTION_DIM)
    assert value.shape == (B, 1)
    assert jnp.allclose(mean, r_mean, rtol=1e-4, atol=5e-4)
    assert jnp.allclose(std, r_std, rtol=1e-4, atol=5e-4)
    assert jnp.allclose(value, r_value, rtol=1e-4, atol=5e-4)

    print("KERNEL_OK")
</pallas_src>

<mosaic_0001>
module attributes {stable_mosaic.version = 11 : i64} {
  func.func @actor_critic_kernel(%arg0: i32, %arg1: memref<128x16xf32, #tpu.memory_space<vmem>>, %arg2: memref<16x32xf32, #tpu.memory_space<vmem>>, %arg3: memref<32x8xf32, #tpu.memory_space<vmem>>, %arg4: memref<8x32xf32, #tpu.memory_space<vmem>>, %arg5: memref<128x8xf32, #tpu.memory_space<vmem>>) attributes {dimension_semantics = [#tpu.dimension_semantics<parallel>], iteration_bounds = array<i64: 2>, scalar_prefetch = 0 : i64, scratch_operands = 0 : i64, tpu.core_type = #tpu.core_type<tc>, window_params = [{transform_indices = @transform_0, window_bounds = array<i64: 128, 16>}, {pipeline_mode = #tpu.pipeline_mode<synchronous>, transform_indices = @transform_1, window_bounds = array<i64: 16, 32>}, {pipeline_mode = #tpu.pipeline_mode<synchronous>, transform_indices = @transform_2, window_bounds = array<i64: 32, 8>}, {pipeline_mode = #tpu.pipeline_mode<synchronous>, transform_indices = @transform_3, window_bounds = array<i64: 8, 32>}, {transform_indices = @transform_4, window_bounds = array<i64: 128, 8>}]} {
    %c0 = arith.constant 0 : index
    %c0_0 = arith.constant 0 : index
    %0 = vector.load %arg1[%c0, %c0_0] : memref<128x16xf32, #tpu.memory_space<vmem>>, vector<128x16xf32>
    %c0_1 = arith.constant 0 : index
    %c0_2 = arith.constant 0 : index
    %1 = vector.load %arg4[%c0_1, %c0_2] : memref<8x32xf32, #tpu.memory_space<vmem>>, vector<8x32xf32>
    %2 = vector.extract_strided_slice %1 {offsets = [0, 0], sizes = [1, 32], strides = [1, 1]} : vector<8x32xf32> to vector<1x32xf32>
    %3 = vector.extract_strided_slice %1 {offsets = [1, 0], sizes = [1, 32], strides = [1, 1]} : vector<8x32xf32> to vector<1x32xf32>
    %4 = vector.extract_strided_slice %1 {offsets = [2, 0], sizes = [1, 32], strides = [1, 1]} : vector<8x32xf32> to vector<1x32xf32>
    %5 = vector.extract_strided_slice %1 {offsets = [3, 0], sizes = [1, 8], strides = [1, 1]} : vector<8x32xf32> to vector<1x8xf32>
    %c0_3 = arith.constant 0 : index
    %c0_4 = arith.constant 0 : index
    %6 = vector.load %arg2[%c0_3, %c0_4] : memref<16x32xf32, #tpu.memory_space<vmem>>, vector<16x32xf32>
    %cst = arith.constant dense<0.000000e+00> : vector<128x32xf32>
    %7 = tpu.matmul %0, %6, %cst {dimension_numbers = #tpu.dot_dimension_numbers<[1], [0], [0], [1], [0, 0, 1, 1], [], []>} : vector<128x16xf32>, vector<16x32xf32>, vector<128x32xf32> -> vector<128x32xf32>
    %8 = vector.broadcast %2 : vector<1x32xf32> to vector<128x32xf32>
    %9 = arith.addf %7, %8 : vector<128x32xf32>
    %cst_5 = arith.constant 0.000000e+00 : f32
    %10 = vector.broadcast %cst_5 : f32 to vector<128x32xf32>
    %11 = arith.maximumf %9, %10 : vector<128x32xf32>
    %cst_6 = arith.constant dense<0.000000e+00> : vector<128xf32>
    %12 = vector.multi_reduction <add>, %11, %cst_6 [1] : vector<128x32xf32> to vector<128xf32>
    %13 = vector.shape_cast %12 : vector<128xf32> to vector<128x1xf32>
    %cst_7 = arith.constant 3.200000e+01 : f32
    %14 = vector.broadcast %cst_7 : f32 to vector<128x1xf32>
    %15 = arith.divf %13, %14 : vector<128x1xf32>
    %16 = vector.broadcast %15 : vector<128x1xf32> to vector<128x32xf32>
    %17 = arith.subf %11, %16 : vector<128x32xf32>
    %18 = arith.mulf %17, %17 : vector<128x32xf32>
    %cst_8 = arith.constant dense<0.000000e+00> : vector<128xf32>
    %19 = vector.multi_reduction <add>, %18, %cst_8 [1] : vector<128x32xf32> to vector<128xf32>
    %20 = vector.shape_cast %19 : vector<128xf32> to vector<128x1xf32>
    %cst_9 = arith.constant 3.200000e+01 : f32
    %21 = vector.broadcast %cst_9 : f32 to vector<128x1xf32>
    %22 = arith.divf %20, %21 : vector<128x1xf32>
    %23 = vector.broadcast %15 : vector<128x1xf32> to vector<128x32xf32>
    %24 = arith.subf %11, %23 : vector<128x32xf32>
    %cst_10 = arith.constant 9.99999974E-6 : f32
    %25 = vector.broadcast %cst_10 : f32 to vector<128x1xf32>
    %26 = arith.addf %22, %25 : vector<128x1xf32>
    %27 = math.rsqrt %26 : vector<128x1xf32>
    %28 = vector.broadcast %27 : vector<128x1xf32> to vector<128x32xf32>
    %29 = arith.mulf %24, %28 : vector<128x32xf32>
    %30 = vector.broadcast %3 : vector<1x32xf32> to vector<128x32xf32>
    %31 = arith.mulf %29, %30 : vector<128x32xf32>
    %32 = vector.broadcast %4 : vector<1x32xf32> to vector<128x32xf32>
    %33 = arith.addf %31, %32 : vector<128x32xf32>
    %c0_11 = arith.constant 0 : index
    %c0_12 = arith.constant 0 : index
    %34 = vector.load %arg3[%c0_11, %c0_12] : memref<32x8xf32, #tpu.memory_space<vmem>>, vector<32x8xf32>
    %cst_13 = arith.constant dense<0.000000e+00> : vector<128x8xf32>
    %35 = tpu.matmul %33, %34, %cst_13 {dimension_numbers = #tpu.dot_dimension_numbers<[1], [0], [0], [1], [0, 0, 1, 1], [], []>} : vector<128x32xf32>, vector<32x8xf32>, vector<128x8xf32> -> vector<128x8xf32>
    %36 = vector.broadcast %5 : vector<1x8xf32> to vector<128x8xf32>
    %37 = arith.addf %35, %36 : vector<128x8xf32>
    %c0_14 = arith.constant 0 : index
    %c0_15 = arith.constant 0 : index
    %38 = vector.load %arg5[%c0_14, %c0_15] : memref<128x8xf32, #tpu.memory_space<vmem>>, vector<128x8xf32>
    tpu.vector_store %arg5[%c0_14, %c0_15], %37 {strides = array<i32>} : memref<128x8xf32, #tpu.memory_space<vmem>>, vector<128x8xf32>,
    return
  }
  func.func @transform_0(%arg0: i32) -> (i32, i32) {
    %c0_i32 = arith.constant 0 : i32
    %c0_i32_0 = arith.constant 0 : i32
    return %arg0, %c0_i32 : i32, i32
  }
  func.func @transform_1(%arg0: i32) -> (i32, i32) {
    %c0_i32 = arith.constant 0 : i32
    %c0_i32_0 = arith.constant 0 : i32
    %c0_i32_1 = arith.constant 0 : i32
    return %c0_i32, %c0_i32_0 : i32, i32
  }
  func.func @transform_2(%arg0: i32) -> (i32, i32) {
    %c0_i32 = arith.constant 0 : i32
    %c0_i32_0 = arith.constant 0 : i32
    %c0_i32_1 = arith.constant 0 : i32
    return %c0_i32, %c0_i32_0 : i32, i32
  }
  func.func @transform_3(%arg0: i32) -> (i32, i32) {
    %c0_i32 = arith.constant 0 : i32
    %c0_i32_0 = arith.constant 0 : i32
    %c0_i32_1 = arith.constant 0 : i32
    return %c0_i32, %c0_i32_0 : i32, i32
  }
  func.func @transform_4(%arg0: i32) -> (i32, i32) {
    %c0_i32 = arith.constant 0 : i32
    %c0_i32_0 = arith.constant 0 : i32
    return %arg0, %c0_i32 : i32, i32
  }
}

</mosaic_0001>

<bundles_post_ra>
// kernel: tpu_custom_call.1
= control target key start
LH: loop header
LB: loop body
LE: loop exit
PB: predicated region body
PF: predicated region fallthrough
CT: control target
= control target key end

     0   :  { %s1184_s15 = smov 0   ;;  %s1603_s0 = inlined_call_operand.vmem [shape: f32[256,16], index: 0, kind: input, shape index: {}]   ;;  %s1604_s1 = inlined_call_operand.vmem [shape: f32[16,32], index: 1, kind: input, shape index: {}]   ;;  %s1605_s2 = inlined_call_operand.vmem [shape: f32[32,8], index: 2, kind: input, shape index: {}]   ;;  %s1606_s3 = inlined_call_operand.vmem [shape: f32[8,32], index: 3, kind: input, shape index: {}]   ;;  %s1607_s4 = inlined_call_operand.vmem [shape: f32[256,8], index: 4, kind: output, shape index: {}]  }
   0x1 LB: > { %s958_s16 = sadd.s32 4294967295, %s1157_s15   ;;  %p962_p0 = scmp.ge.s32.totalorder %s1157_s15, 1  ;;  %s1157_s15 = sphi %s1184_s15, %s14_s15  }
   0x2   : > { %p163_p1 = scmp.lt.s32.totalorder %s1157_s15, 3 }
   0x4   : > { %p164_p2 = pnand %p962_p0, %p163_p1 }
   0x5   : > { %v218_v0 = vld [vmem:[%s1604_s1] sm:$0xff] (!%p164_p2)  ;;  %v219_v1 = vld [vmem:[%s1604_s1 + $0x8] sm:$0xff] (!%p164_p2)  ;;  %s963_s21 = sshll.u32 (!%p164_p2), %s958_s16, 4  ;;  %vm224_vm0 = vcmask (!%p164_p2), 130048   ;;  %v220_v19 = vlaneseq (!%p164_p2)  ;;  %vm434_vm1 = vcmask (!%p164_p2), 261120   ;;  %vm885_vm2 = vcmask (!%p164_p2), 64512  }
   0x6   : > { %167 = sbr.rel (%p164_p2) target bundleno = 796 (0x31c), region = 36  ;;  %v1099_v2 = vpack.c.bf16 (!%p164_p2), %v219_v1, %v218_v0  ;;  %p190_p3 = scmp.lt.s32.totalorder (!%p164_p2), %s963_s21, 31  ;;  %v1246_v22 = vld [vmem:[%s1606_s3] sm:$0xff] (!%p164_p2) }
   0x7   : > { %v1240_v20 = vshrl.u32 (!%p164_p2), %v220_v19, 7 }
   0x8   : > { %1100 = vmatprep.subr.bf16.mxu0 (!%p164_p2), %v1099_v2 }
   0x9   : > { %1102 = vmatpush3.bf16.msra.mxu0 (!%p164_p2), %v1099_v2  ;;  %v222_v21 = vsub.s32 (!%p164_p2), 0, %v1240_v20 }
   0xb   : > { %v1249_v23 = vrot.slane (!%p164_p2), %v1246_v22, %v222_v21 }
   0xd   : > { %s1609_s21 = smov (!%p190_p3, %s963_s21), 31 }
   0xe   : > { %s964_s22 = sshll.u32 %s1609_s21, 3 }
   0xf   : > { %s1206_s25 = scalar_lea.vmem %s1603_s0, %s964_s22  ;;  %s1566_s12 = scalar_lea.vmem %s1607_s4, %s964_s22 }
  0x10   : > { %v201_v3 = vld [vmem:[%s1206_s25] sm:$0xff]  ;;  %v202_v4 = vld [vmem:[%s1206_s25 + $0x8] sm:$0xff]  ;;  %v203_v5 = vld [vmem:[%s1206_s25 + $0x10] sm:$0xff] }
  0x11   : > { %1043 = vmatprep.mubr.msk.f32.mxu0 %vm224_vm0, %v201_v3  ;;  %v204_v6 = vld [vmem:[%s1206_s25 + $0x18] sm:$0xff]  ;;  %v205_v7 = vld [vmem:[%s1206_s25 + $0x20] sm:$0xff]  ;;  %v206_v8 = vld [vmem:[%s1206_s25 + $0x28] sm:$0xff] }
  0x12   : > { %1044 = vmatmul.mubr.msk.f32.vlgmr.msra.gmra.mrb[0].mxu0 %vm224_vm0, %v202_v4  ;;  %v207_v9 = vld [vmem:[%s1206_s25 + $0x30] sm:$0xff]  ;;  %v208_v10 = vld [vmem:[%s1206_s25 + $0x38] sm:$0xff]  ;;  %v209_v11 = vld [vmem:[%s1206_s25 + $0x40] sm:$0xff] }
  0x13   : > { %1046 = vmatprep.mubr.msk.f32.mxu0 %vm224_vm0, %v203_v5  ;;  %v210_v12 = vld [vmem:[%s1206_s25 + $0x48] sm:$0xff]  ;;  %v211_v13 = vld [vmem:[%s1206_s25 + $0x50] sm:$0xff]  ;;  %v212_v14 = vld [vmem:[%s1206_s25 + $0x58] sm:$0xff] }
  0x14   : > { %v213_v15 = vld [vmem:[%s1206_s25 + $0x60] sm:$0xff]  ;;  %v214_v16 = vld [vmem:[%s1206_s25 + $0x68] sm:$0xff]  ;;  %v215_v17 = vld [vmem:[%s1206_s25 + $0x70] sm:$0xff] }
  0x15   : > { %v216_v18 = vld [vmem:[%s1206_s25 + $0x78] sm:$0xff] }
  0x16   : > { %1047 = vmatmul.mubr.msk.f32.gmra.mrb[2].mxu0 %vm224_vm0, %v204_v6 }
  0x17   : > { %1049 = vmatprep.mubr.msk.f32.mxu0 %vm224_vm0, %v205_v7 }
  0x1a   : > { %1050 = vmatmul.mubr.msk.f32.gmra.mrb[4].mxu0 %vm224_vm0, %v206_v8 }
  0x1b   : > { %1052 = vmatprep.mubr.msk.f32.mxu0 %vm224_vm0, %v207_v9 }
  0x1e   : > { %1053 = vmatmul.mubr.msk.f32.gmra.mrb[6].mxu0 %vm224_vm0, %v208_v10 }
  0x1f   : > { %1055 = vmatprep.mubr.msk.f32.mxu0 %vm224_vm0, %v209_v11 }
  0x22   : > { %1056 = vmatmul.mubr.msk.f32.gmra.mrb[8].mxu0 %vm224_vm0, %v210_v12 }
  0x23   : > { %1058 = vmatprep.mubr.msk.f32.mxu0 %vm224_vm0, %v211_v13 }
  0x26   : > { %1059 = vmatmul.mubr.msk.f32.gmra.mrb[10].mxu0 %vm224_vm0, %v212_v14 }
  0x27   : > { %1061 = vmatprep.mubr.msk.f32.mxu0 %vm224_vm0, %v213_v15 }
  0x2a   : > { %1062 = vmatmul.mubr.msk.f32.gmra.mrb[12].mxu0 %vm224_vm0, %v214_v16 }
  0x2b   : > { %1064 = vmatprep.mubr.msk.f32.mxu0 %vm224_vm0, %v215_v17 }
  0x2e   : > { %1065 = vmatmul.mubr.msk.f32.gmra.mrb[14].mxu0 %vm224_vm0, %v216_v18 }
  0xe5   : > { %v1045_v24 = vpop.f32.mrb[0].mxu0 }
  0xe6   : > { %v339_v25 = vpop.f32.mrb[1].mxu0  ;;  %v1252_v26 = vadd.f32 %v1045_v24, %v1249_v23 }
  0xe7   : > { %v1255_v27 = vadd.f32 %v339_v25, %v1249_v23 }
  0xe8   : > { %v419_v31 = vmax.f32 %v1252_v26, 0.0 }
  0xe9   : > { %v418_v28 = vmax.f32 %v1255_v27, 0.0  ;;  %v1048_v29 = vpop.f32.mrb[2].mxu0 }
  0xea   : > { %v349_v30 = vpop.f32.mrb[3].mxu0  ;;  %v1260_v32 = vadd.f32 %v1048_v29, %v1249_v23  ;;  %v438_v42 = vsel %vm434_vm1, %v419_v31, 0.0 }
  0xeb   : > { %v1263_v33 = vadd.f32 %v349_v30, %v1249_v23  ;;  %v435_v34 = vsel %vm434_vm1, %v418_v28, 0.0 }
  0xec   : > { %436 = vadd.xlane.f32.xlu0 %v435_v34  ;;  %v421_v39 = vmax.f32 %v1260_v32, 0.0 }
  0xed   : > { %v420_v35 = vmax.f32 %v1263_v33, 0.0  ;;  %v1051_v36 = vpop.f32.mrb[4].mxu0 }
  0xee   : > { %v1270_v37 = vadd.f32 %v1051_v36, %v1249_v23  ;;  %v359_v38 = vpop.f32.mrb[5].mxu0  ;;  %v444_v49 = vsel %vm434_vm1, %v421_v39, 0.0 }
  0xef   : > { %v1274_v40 = vadd.f32 %v359_v38, %v1249_v23  ;;  %v441_v41 = vsel %vm434_vm1, %v420_v35, 0.0 }
  0xf0   : > { %442 = vadd.xlane.f32.xlu1 %v441_v41  ;;  %439 = vadd.xlane.f32.xlu0 %v438_v42  ;;  %v423_v45 = vmax.f32 %v1270_v37, 0.0 }
  0xf1   : > { %v422_v43 = vmax.f32 %v1274_v40, 0.0  ;;  %v1054_v44 = vpop.f32.mrb[6].mxu0 }
  0xf2   : > { %v369_v46 = vpop.f32.mrb[7].mxu0  ;;  %v1285_v47 = vadd.f32 %v1054_v44, %v1249_v23  ;;  %v450_v54 = vsel %vm434_vm1, %v423_v45, 0.0 }
  0xf3   : > { %v1288_v48 = vadd.f32 %v369_v46, %v1249_v23  ;;  %v447_v50 = vsel %vm434_vm1, %v422_v43, 0.0 }
  0xf4   : > { %445 = vadd.xlane.f32.xlu1 %v444_v49  ;;  %448 = vadd.xlane.f32.xlu0 %v447_v50  ;;  %v425_v55 = vmax.f32 %v1285_v47, 0.0 }
  0xf5   : > { %v424_v51 = vmax.f32 %v1288_v48, 0.0  ;;  %v1057_v52 = vpop.f32.mrb[8].mxu0 }
  0xf6   : > { %v379_v53 = vpop.f32.mrb[9].mxu0  ;;  %v1302_v56 = vadd.f32 %v1057_v52, %v1249_v23  ;;  %v456_v1 = vsel %vm434_vm1, %v425_v55, 0.0 }
  0xf7   : > { %v1305_v57 = vadd.f32 %v379_v53, %v1249_v23  ;;  %v453_v58 = vsel %vm434_vm1, %v424_v51, 0.0 }
  0xf8   : > { %451 = vadd.xlane.f32.xlu1 %v450_v54  ;;  %454 = vadd.xlane.f32.xlu0 %v453_v58  ;;  %v427_v63 = vmax.f32 %v1302_v56, 0.0 }
  0xf9   : > { %v426_v59 = vmax.f32 %v1305_v57, 0.0  ;;  %v1060_v60 = vpop.f32.mrb[10].mxu0 }
  0xfa   : > { %v1312_v61 = vadd.f32 %v1060_v60, %v1249_v23  ;;  %v389_v62 = vpop.f32.mrb[11].mxu0  ;;  %v462_v9 = vsel %vm434_vm1, %v427_v63, 0.0 }
  0xfb   : > { %v1316_v0 = vadd.f32 %v389_v62, %v1249_v23  ;;  %v459_v2 = vsel %vm434_vm1, %v426_v59, 0.0 }
  0xfc   : > { %457 = vadd.xlane.f32.xlu1 %v456_v1  ;;  %460 = vadd.xlane.f32.xlu0 %v459_v2  ;;  %v429_v5 = vmax.f32 %v1312_v61, 0.0 }
  0xfd   : > { %v428_v3 = vmax.f32 %v1316_v0, 0.0  ;;  %v1063_v4 = vpop.f32.mrb[12].mxu0 }
  0xfe   : > { %v399_v6 = vpop.f32.mrb[13].mxu0  ;;  %v1327_v7 = vadd.f32 %v1063_v4, %v1249_v23  ;;  %v468_v14 = vsel %vm434_vm1, %v429_v5, 0.0 }
  0xff   : > { %v1330_v8 = vadd.f32 %v399_v6, %v1249_v23  ;;  %v465_v10 = vsel %vm434_vm1, %v428_v3, 0.0 }
 0x100   : > { %463 = vadd.xlane.f32.xlu1 %v462_v9  ;;  %466 = vadd.xlane.f32.xlu0 %v465_v10  ;;  %v431_v15 = vmax.f32 %v1327_v7, 0.0 }
 0x101   : > { %v430_v11 = vmax.f32 %v1330_v8, 0.0  ;;  %v1066_v12 = vpop.f32.mrb[14].mxu0 }
 0x102   : > { %v409_v13 = vpop.f32.mrb[15].mxu0  ;;  %v1344_v16 = vadd.f32 %v1066_v12, %v1249_v23  ;;  %v474_v24 = vsel %vm434_vm1, %v431_v15, 0.0 }
 0x103   : > { %v1347_v17 = vadd.f32 %v409_v13, %v1249_v23  ;;  %v471_v18 = vsel %vm434_vm1, %v430_v11, 0.0 }
 0x104   : > { %469 = vadd.xlane.f32.xlu1 %v468_v14  ;;  %472 = vadd.xlane.f32.xlu0 %v471_v18  ;;  %v433_v21 = vmax.f32 %v1344_v16, 0.0 }
 0x105   : > { %v432_v19 = vmax.f32 %v1347_v17, 0.0 }
 0x106   : > { %v480_v23 = vsel %vm434_vm1, %v433_v21, 0.0 }
 0x107   : > { %v477_v25 = vsel %vm434_vm1, %v432_v19, 0.0 }
 0x108   : > { %475 = vadd.xlane.f32.xlu1 %v474_v24  ;;  %478 = vadd.xlane.f32.xlu0 %v477_v25 }
 0x10c   : > { %481 = vadd.xlane.f32.xlu1 %v480_v23 }
 0x179   : > { %v437_v29 = vpop.xlane.xlu0 %436 }
 0x17a   : > { %v484_v30 = vmul.f32 0.03125, %v437_v29 }
 0x17c   : > { %v1365_v34 = vsub.f32 %v418_v28, %v484_v30 }
 0x17d   : > { %v443_v36 = vpop.xlane.xlu1 %442  ;;  %v440_v38 = vpop.xlane.xlu0 %439 }
 0x17e   : > { %v486_v41 = vmul.f32 0.03125, %v443_v36  ;;  %v485_v42 = vmul.f32 0.03125, %v440_v38  ;;  %v516_v44 = vmul.f32 %v1365_v34, %v1365_v34 }
 0x180   : > { %v1371_v46 = vsub.f32 %v420_v35, %v486_v41  ;;  %v1375_v49 = vsub.f32 %v419_v31, %v485_v42  ;;  %v532_v50 = vsel %vm434_vm1, %v516_v44, 0.0 }
 0x181   : > { %v446_v27 = vpop.xlane.xlu1 %445  ;;  %533 = vadd.xlane.f32.xlu0 %v532_v50  ;;  %v449_v28 = vpop.xlane.xlu0 %448 }
 0x182   : > { %v487_v52 = vmul.f32 0.03125, %v446_v27  ;;  %v488_v53 = vmul.f32 0.03125, %v449_v28  ;;  %v518_v54 = vmul.f32 %v1371_v46, %v1371_v46  ;;  %v517_v58 = vmul.f32 %v1375_v49, %v1375_v49 }
 0x184   : > { %v1384_v33 = vsub.f32 %v421_v39, %v487_v52  ;;  %v1388_v26 = vsub.f32 %v422_v43, %v488_v53  ;;  %v538_v31 = vsel %vm434_vm1, %v518_v54, 0.0  ;;  %v535_v35 = vsel %vm434_vm1, %v517_v58, 0.0 }
 0x185   : > { %v452_v60 = vpop.xlane.xlu1 %451  ;;  %539 = vadd.xlane.f32.xlu0 %v538_v31  ;;  %536 = vadd.xlane.f32.xlu1 %v535_v35  ;;  %v455_v62 = vpop.xlane.xlu0 %454 }
 0x186   : > { %v489_v1 = vmul.f32 0.03125, %v452_v60  ;;  %v490_v2 = vmul.f32 0.03125, %v455_v62  ;;  %v519_v4 = vmul.f32 %v1384_v33, %v1384_v33  ;;  %v520_v32 = vmul.f32 %v1388_v26, %v1388_v26 }
 0x188   : > { %v1398_v39 = vsub.f32 %v423_v45, %v489_v1  ;;  %v1402_v40 = vsub.f32 %v424_v51, %v490_v2  ;;  %v541_v43 = vsel %vm434_vm1, %v519_v4, 0.0  ;;  %v544_v6 = vsel %vm434_vm1, %v520_v32, 0.0  ;;  %v684_v2 = vld [vmem:[%s1605_s2] sm:$0xff]  ;;  %v685_v4 = vld [vmem:[%s1605_s2 + $0x8] sm:$0xff]  ;;  %v686_v32 = vld [vmem:[%s1605_s2 + $0x10] sm:$0xff] }
 0x189   : > { %v458_v9 = vpop.xlane.xlu1 %457  ;;  %542 = vadd.xlane.f32.xlu1 %v541_v43  ;;  %545 = vadd.xlane.f32.xlu0 %v544_v6  ;;  %v461_v10 = vpop.xlane.xlu0 %460  ;;  %v1103_v16 = vpack.c.bf16 %v685_v4, %v684_v2  ;;  %v687_v43 = vld [vmem:[%s1605_s2 + $0x18] sm:$0xff] }
 0x18a   : > { %v491_v12 = vmul.f32 0.03125, %v458_v9  ;;  %v492_v13 = vmul.f32 0.03125, %v461_v10  ;;  %v521_v14 = vmul.f32 %v1398_v39, %v1398_v39  ;;  %v522_v37 = vmul.f32 %v1402_v40, %v1402_v40 }
 0x18b   : > { %1104 = vmatprep.subr.bf16.mxu1 %v1103_v16  ;;  %v1107_v6 = vpack.c.bf16 %v687_v43, %v686_v32 }
 0x18c   : > { %v1412_v45 = vsub.f32 %v425_v55, %v491_v12  ;;  %v1416_v48 = vsub.f32 %v426_v59, %v492_v13  ;;  %v547_v51 = vsel %vm434_vm1, %v521_v14, 0.0  ;;  %v550_v18 = vsel %vm434_vm1, %v522_v37, 0.0  ;;  %1106 = vmatpush3.bf16.msra.mxu1 %v1103_v16 }
 0x18d   : > { %v464_v24 = vpop.xlane.xlu1 %463  ;;  %548 = vadd.xlane.f32.xlu1 %v547_v51  ;;  %551 = vadd.xlane.f32.xlu0 %v550_v18  ;;  %v467_v25 = vpop.xlane.xlu0 %466 }
 0x18e   : > { %v493_v23 = vmul.f32 0.03125, %v464_v24  ;;  %v494_v29 = vmul.f32 0.03125, %v467_v25  ;;  %v523_v30 = vmul.f32 %v1412_v45, %v1412_v45  ;;  %v524_v47 = vmul.f32 %v1416_v48, %v1416_v48  ;;  %1108 = vmatprep.subr.bf16.mxu1 %v1107_v6 }
 0x190   : > { %v1426_v55 = vsub.f32 %v427_v63, %v493_v23  ;;  %v1430_v57 = vsub.f32 %v428_v3, %v494_v29  ;;  %v553_v59 = vsel %vm434_vm1, %v523_v30, 0.0  ;;  %v556_v36 = vsel %vm434_vm1, %v524_v47, 0.0  ;;  %1110 = vmatpush3.bf16.msra.mxu1 %v1107_v6 }
 0x191   : > { %v470_v38 = vpop.xlane.xlu1 %469  ;;  %554 = vadd.xlane.f32.xlu1 %v553_v59  ;;  %557 = vadd.xlane.f32.xlu0 %v556_v36  ;;  %v473_v41 = vpop.xlane.xlu0 %472  ;;  %v646_v47 = vsub.s32 1, %v1240_v20 }
 0x192   : > { %v495_v42 = vmul.f32 0.03125, %v470_v38  ;;  %v496_v44 = vmul.f32 0.03125, %v473_v41  ;;  %v525_v50 = vmul.f32 %v1426_v55, %v1426_v55  ;;  %v526_v56 = vmul.f32 %v1430_v57, %v1430_v57 }
 0x194   : > { %v1440_v63 = vsub.f32 %v429_v5, %v495_v42  ;;  %v1444_v0 = vsub.f32 %v430_v11, %v496_v44  ;;  %v559_v3 = vsel %vm434_vm1, %v525_v50, 0.0  ;;  %v562_v27 = vsel %vm434_vm1, %v526_v56, 0.0 }
 0x195   : > { %v476_v28 = vpop.xlane.xlu1 %475  ;;  %560 = vadd.xlane.f32.xlu1 %v559_v3  ;;  %563 = vadd.xlane.f32.xlu0 %v562_v27  ;;  %v479_v52 = vpop.xlane.xlu0 %478  ;;  %v666_v42 = vsub.s32 2, %v1240_v20  ;;  %v1490_v56 = vrot.slane %v1246_v22, %v646_v47 }
 0x196   : > { %v497_v53 = vmul.f32 0.03125, %v476_v28  ;;  %v498_v54 = vmul.f32 0.03125, %v479_v52  ;;  %v527_v58 = vmul.f32 %v1440_v63, %v1440_v63  ;;  %v528_v61 = vmul.f32 %v1444_v0, %v1444_v0 }
 0x198   : > { %v1454_v5 = vsub.f32 %v431_v15, %v497_v53  ;;  %v1458_v8 = vsub.f32 %v432_v19, %v498_v54  ;;  %v565_v11 = vsel %vm434_vm1, %v527_v58, 0.0  ;;  %v568_v31 = vsel %vm434_vm1, %v528_v61, 0.0 }
 0x199   : > { %v482_v35 = vpop.xlane.xlu1 %481  ;;  %566 = vadd.xlane.f32.xlu1 %v565_v11  ;;  %569 = vadd.xlane.f32.xlu0 %v568_v31  ;;  %v1494_v58 = vrot.slane %v1246_v22, %v666_v42 }
 0x19a   : > { %v499_v60 = vmul.f32 0.03125, %v482_v35  ;;  %v529_v62 = vmul.f32 %v1454_v5, %v1454_v5  ;;  %v530_v7 = vmul.f32 %v1458_v8, %v1458_v8 }
 0x19c   : > { %v1468_v15 = vsub.f32 %v433_v21, %v499_v60  ;;  %v571_v17 = vsel %vm434_vm1, %v529_v62, 0.0  ;;  %v574_v19 = vsel %vm434_vm1, %v530_v7, 0.0 }
 0x19d   : > { %572 = vadd.xlane.f32.xlu1 %v571_v17  ;;  %575 = vadd.xlane.f32.xlu0 %v574_v19 }
 0x19e   : > { %v531_v1 = vmul.f32 %v1468_v15, %v1468_v15 }
 0x1a0   : > { %v577_v21 = vsel %vm434_vm1, %v531_v1, 0.0 }
 0x1a1   : > { %578 = vadd.xlane.f32.xlu1 %v577_v21 }
 0x20e   : > { %v534_v9 = vpop.xlane.xlu0 %533 }
 0x20f   : > { %v580_v10 = vmul.f32 0.03125, %v534_v9 }
 0x211   : > { %v596_v12 = vadd.f32 1e-05, %v580_v10 }
 0x212   : > { %v537_v13 = vpop.xlane.xlu1 %536  ;;  %v540_v14 = vpop.xlane.xlu0 %539 }
 0x213   : > { %1119 = vrsqrt.f32 %v596_v12  ;;  %v581_v37 = vmul.f32 0.03125, %v537_v13  ;;  %v582_v51 = vmul.f32 0.03125, %v540_v14 }
 0x215   : > { %v597_v18 = vadd.f32 1e-05, %v581_v37  ;;  %v598_v24 = vadd.f32 1e-05, %v582_v51 }
 0x216   : > { %v543_v25 = vpop.xlane.xlu1 %542  ;;  %v546_v23 = vpop.xlane.xlu0 %545 }
 0x217   : > { %1121 = vrsqrt.f32 %v597_v18  ;;  %v583_v29 = vmul.f32 0.03125, %v543_v25  ;;  %v584_v30 = vmul.f32 0.03125, %v546_v23 }
 0x218   : > { %1123 = vrsqrt.f32 %v598_v24 }
 0x219   : > { %v599_v59 = vadd.f32 1e-05, %v583_v29  ;;  %v600_v36 = vadd.f32 1e-05, %v584_v30 }
 0x21a   : > { %v549_v38 = vpop.xlane.xlu1 %548  ;;  %v552_v41 = vpop.xlane.xlu0 %551 }
 0x21b   : > { %1125 = vrsqrt.f32 %v599_v59  ;;  %v585_v44 = vmul.f32 0.03125, %v549_v38  ;;  %v586_v50 = vmul.f32 0.03125, %v552_v41 }
 0x21c   : > { %1127 = vrsqrt.f32 %v600_v36 }
 0x21d   : > { %v1120_v3 = vpop.eup %1119  ;;  %v601_v27 = vadd.f32 1e-05, %v585_v44  ;;  %v602_v28 = vadd.f32 1e-05, %v586_v50 }
 0x21e   : > { %v555_v52 = vpop.xlane.xlu1 %554  ;;  %v558_v53 = vpop.xlane.xlu0 %557  ;;  %v628_v54 = vmul.f32 %v1120_v3, %v1365_v34 }
 0x21f   : > { %1129 = vrsqrt.f32 %v601_v27  ;;  %v587_v61 = vmul.f32 0.03125, %v555_v52  ;;  %v588_v11 = vmul.f32 0.03125, %v558_v53 }
 0x220   : > { %1131 = vrsqrt.f32 %v602_v28  ;;  %v648_v31 = vmul.f32 %v1490_v56, %v628_v54 }
 0x221   : > { %v1122_v35 = vpop.eup %1121  ;;  %v603_v60 = vadd.f32 1e-05, %v587_v61  ;;  %v604_v62 = vadd.f32 1e-05, %v588_v11 }
 0x222   : > { %v1124_v7 = vpop.eup %1123  ;;  %v561_v17 = vpop.xlane.xlu1 %560  ;;  %v668_v1 = vadd.f32 %v1494_v58, %v648_v31  ;;  %v629_v2 = vmul.f32 %v1122_v35, %v1375_v49 }
 0x223   : > { %v564_v19 = vpop.xlane.xlu0 %563  ;;  %1133 = vrsqrt.f32 %v603_v60  ;;  %v589_v34 = vmul.f32 0.03125, %v561_v17  ;;  %v630_v16 = vmul.f32 %v1124_v7, %v1371_v46 }
 0x224   : > { %v590_v4 = vmul.f32 0.03125, %v564_v19  ;;  %1135 = vrsqrt.f32 %v604_v62  ;;  %1075 = vmatprep.mubr.msk.f32.mxu1 %vm434_vm1, %v668_v1  ;;  %v649_v21 = vmul.f32 %v1490_v56, %v629_v2 }
 0x225   : > { %v1126_v32 = vpop.eup %1125  ;;  %v605_v43 = vadd.f32 1e-05, %v589_v34  ;;  %v650_v9 = vmul.f32 %v1490_v56, %v630_v16 }
 0x226   : > { %v606_v6 = vadd.f32 1e-05, %v590_v4  ;;  %v1128_v10 = vpop.eup %1127  ;;  %v567_v12 = vpop.xlane.xlu1 %566  ;;  %v669_v49 = vadd.f32 %v1494_v58, %v649_v21  ;;  %v631_v14 = vmul.f32 %v1126_v32, %v1384_v33 }
 0x227   : > { %v570_v13 = vpop.xlane.xlu0 %569  ;;  %1137 = vrsqrt.f32 %v605_v43  ;;  %v591_v37 = vmul.f32 0.03125, %v567_v12  ;;  %v670_v51 = vadd.f32 %v1494_v58, %v650_v9  ;;  %v632_v24 = vmul.f32 %v1128_v10, %v1388_v26 }
 0x228   : > { %v592_v46 = vmul.f32 0.03125, %v570_v13  ;;  %1139 = vrsqrt.f32 %v606_v6  ;;  %1076 = vmatmul.mubr.msk.f32.vlgmr.msra.gmra.mrb[0].mxu1 %vm434_vm1, %v669_v49  ;;  %v651_v18 = vmul.f32 %v1490_v56, %v631_v14 }
 0x229   : > { %v1130_v25 = vpop.eup %1129  ;;  %v607_v23 = vadd.f32 1e-05, %v591_v37  ;;  %1078 = vmatprep.mubr.msk.f32.mxu1 %vm434_vm1, %v670_v51  ;;  %v652_v36 = vmul.f32 %v1490_v56, %v632_v24  ;;  %v690_v24 = vsub.s32 3, %v1240_v20 }
 0x22a   : > { %v608_v29 = vadd.f32 1e-05, %v592_v46  ;;  %v1132_v30 = vpop.eup %1131  ;;  %v573_v47 = vpop.xlane.xlu1 %572  ;;  %v671_v59 = vadd.f32 %v1494_v58, %v651_v18  ;;  %v633_v38 = vmul.f32 %v1130_v25, %v1398_v39 }
 0x22b   : > { %v576_v33 = vpop.xlane.xlu0 %575  ;;  %1141 = vrsqrt.f32 %v607_v23  ;;  %v593_v41 = vmul.f32 0.03125, %v573_v47  ;;  %v634_v44 = vmul.f32 %v1132_v30, %v1402_v40  ;;  %v672_v26 = vadd.f32 %v1494_v58, %v652_v36 }
 0x22c   : > { %v594_v42 = vmul.f32 0.03125, %v576_v33  ;;  %1143 = vrsqrt.f32 %v608_v29  ;;  %1079 = vmatmul.mubr.msk.f32.gmra.mrb[2].mxu1 %vm434_vm1, %v671_v59  ;;  %v653_v50 = vmul.f32 %v1490_v56, %v633_v38  ;;  %v691_v25 = vrot.slane %v1246_v22, %v690_v24 }
 0x22d   : > { %v1134_v3 = vpop.eup %1133  ;;  %v609_v27 = vadd.f32 1e-05, %v593_v41  ;;  %v654_v52 = vmul.f32 %v1490_v56, %v634_v44  ;;  %1081 = vmatprep.mubr.msk.f32.mxu1 %vm434_vm1, %v672_v26 }
 0x22e   : > { %v610_v28 = vadd.f32 1e-05, %v594_v42  ;;  %v1136_v53 = vpop.eup %1135  ;;  %v579_v39 = vpop.xlane.xlu1 %578  ;;  %v673_v54 = vadd.f32 %v1494_v58, %v653_v50  ;;  %v635_v40 = vmul.f32 %v1134_v3, %v1412_v45 }
 0x22f   : > { %1145 = vrsqrt.f32 %v609_v27  ;;  %v595_v61 = vmul.f32 0.03125, %v579_v39  ;;  %v674_v11 = vadd.f32 %v1494_v58, %v654_v52  ;;  %v636_v31 = vmul.f32 %v1136_v53, %v1416_v48 }
 0x230   : > { %1147 = vrsqrt.f32 %v610_v28  ;;  %1082 = vmatmul.mubr.msk.f32.gmra.mrb[4].mxu1 %vm434_vm1, %v673_v54  ;;  %v655_v35 = vmul.f32 %v1490_v56, %v635_v40 }
 0x231   : > { %v1138_v60 = vpop.eup %1137  ;;  %v611_v62 = vadd.f32 1e-05, %v595_v61  ;;  %1084 = vmatprep.mubr.msk.f32.mxu1 %vm434_vm1, %v674_v11  ;;  %v656_v7 = vmul.f32 %v1490_v56, %v636_v31 }
 0x232   : > { %v1140_v17 = vpop.eup %1139  ;;  %v675_v45 = vadd.f32 %v1494_v58, %v655_v35  ;;  %v637_v19 = vmul.f32 %v1138_v60, %v1426_v55 }
 0x233   : > { %1149 = vrsqrt.f32 %v611_v62  ;;  %v676_v1 = vadd.f32 %v1494_v58, %v656_v7  ;;  %v638_v48 = vmul.f32 %v1140_v17, %v1430_v57 }
 0x234   : > { %1085 = vmatmul.mubr.msk.f32.gmra.mrb[6].mxu1 %vm434_vm1, %v675_v45  ;;  %v657_v2 = vmul.f32 %v1490_v56, %v637_v19 }
 0x235   : > { %v1142_v34 = vpop.eup %1141  ;;  %1087 = vmatprep.mubr.msk.f32.mxu1 %vm434_vm1, %v676_v1  ;;  %v658_v4 = vmul.f32 %v1490_v56, %v638_v48 }
 0x236   : > { %v1144_v16 = vpop.eup %1143  ;;  %v677_v21 = vadd.f32 %v1494_v58, %v657_v2  ;;  %v639_v32 = vmul.f32 %v1142_v34, %v1440_v63 }
 0x237   : > { %v678_v55 = vadd.f32 %v1494_v58, %v658_v4  ;;  %v640_v43 = vmul.f32 %v1144_v16, %v1444_v0 }
 0x238   : > { %1088 = vmatmul.mubr.msk.f32.gmra.mrb[8].mxu1 %vm434_vm1, %v677_v21  ;;  %v659_v57 = vmul.f32 %v1490_v56, %v639_v32 }
 0x239   : > { %v1146_v6 = vpop.eup %1145  ;;  %1090 = vmatprep.mubr.msk.f32.mxu1 %vm434_vm1, %v678_v55  ;;  %v660_v9 = vmul.f32 %v1490_v56, %v640_v43 }
 0x23a   : > { %v1148_v10 = vpop.eup %1147  ;;  %v679_v12 = vadd.f32 %v1494_v58, %v659_v57  ;;  %v641_v13 = vmul.f32 %v1146_v6, %v1454_v5 }
 0x23b   : > { %v680_v63 = vadd.f32 %v1494_v58, %v660_v9  ;;  %v642_v49 = vmul.f32 %v1148_v10, %v1458_v8 }
 0x23c   : > { %1091 = vmatmul.mubr.msk.f32.gmra.mrb[10].mxu1 %vm434_vm1, %v679_v12  ;;  %v661_v0 = vmul.f32 %v1490_v56, %v641_v13 }
 0x23d   : > { %v1150_v14 = vpop.eup %1149  ;;  %1093 = vmatprep.mubr.msk.f32.mxu1 %vm434_vm1, %v680_v63  ;;  %v662_v37 = vmul.f32 %v1490_v56, %v642_v49 }
 0x23e   : > { %v681_v46 = vadd.f32 %v1494_v58, %v661_v0  ;;  %v643_v51 = vmul.f32 %v1150_v14, %v1468_v15 }
 0x23f   : > { %v682_v5 = vadd.f32 %v1494_v58, %v662_v37 }
 0x240   : > { %1094 = vmatmul.mubr.msk.f32.gmra.mrb[12].mxu1 %vm434_vm1, %v681_v46  ;;  %v663_v8 = vmul.f32 %v1490_v56, %v643_v51 }
 0x241   : > { %1096 = vmatprep.mubr.msk.f32.mxu1 %vm434_vm1, %v682_v5 }
 0x242   : > { %v683_v18 = vadd.f32 %v1494_v58, %v663_v8 }
 0x244   : > { %1097 = vmatmul.mubr.msk.f32.gmra.mrb[14].mxu1 %vm434_vm1, %v683_v18 }
 0x2fb   : > { %v1077_v15 = vpop.f32.mrb[0].mxu1 }
 0x2fc   : > { %v812_v56 = vadd.f32 %v1077_v15, %v691_v25  ;;  %v806_v58 = vpop.f32.mrb[1].mxu1 }
 0x2fd   : > { %v807_v23 = vadd.f32 %v806_v58, %v691_v25 }
 0x2fe   : > { %887 = vst.msk [vmem:[%s1566_s12 + $0x8] sm:$0xff] %vm885_vm2, %v812_v56 }
 0x2ff   : > { %886 = vst.msk [vmem:[%s1566_s12] sm:$0xff] %vm885_vm2, %v807_v23  ;;  %v1080_v20 = vpop.f32.mrb[2].mxu1 }
 0x300   : > { %v822_v22 = vadd.f32 %v1080_v20, %v691_v25  ;;  %v816_v29 = vpop.f32.mrb[3].mxu1 }
 0x301   : > { %v817_v30 = vadd.f32 %v816_v29, %v691_v25 }
 0x302   : > { %889 = vst.msk [vmem:[%s1566_s12 + $0x18] sm:$0xff] %vm885_vm2, %v822_v22 }
 0x303   : > { %888 = vst.msk [vmem:[%s1566_s12 + $0x10] sm:$0xff] %vm885_vm2, %v817_v30  ;;  %v1083_v47 = vpop.f32.mrb[4].mxu1 }
 0x304   : > { %v832_v33 = vadd.f32 %v1083_v47, %v691_v25  ;;  %v826_v59 = vpop.f32.mrb[5].mxu1 }
 0x305   : > { %v827_v36 = vadd.f32 %v826_v59, %v691_v25 }
 0x306   : > { %891 = vst.msk [vmem:[%s1566_s12 + $0x28] sm:$0xff] %vm885_vm2, %v832_v33 }
 0x307   : > { %890 = vst.msk [vmem:[%s1566_s12 + $0x20] sm:$0xff] %vm885_vm2, %v827_v36  ;;  %v1086_v38 = vpop.f32.mrb[6].mxu1 }
 0x308   : > { %v842_v41 = vadd.f32 %v1086_v38, %v691_v25  ;;  %v836_v42 = vpop.f32.mrb[7].mxu1 }
 0x309   : > { %v837_v44 = vadd.f32 %v836_v42, %v691_v25 }
 0x30a   : > { %893 = vst.msk [vmem:[%s1566_s12 + $0x38] sm:$0xff] %vm885_vm2, %v842_v41 }
 0x30b   : > { %892 = vst.msk [vmem:[%s1566_s12 + $0x30] sm:$0xff] %vm885_vm2, %v837_v44  ;;  %v1089_v26 = vpop.f32.mrb[8].mxu1 }
 0x30c   : > { %v852_v50 = vadd.f32 %v1089_v26, %v691_v25  ;;  %v846_v3 = vpop.f32.mrb[9].mxu1 }
 0x30d   : > { %v847_v27 = vadd.f32 %v846_v3, %v691_v25 }
 0x30e   : > { %895 = vst.msk [vmem:[%s1566_s12 + $0x48] sm:$0xff] %vm885_vm2, %v852_v50 }
 0x30f   : > { %894 = vst.msk [vmem:[%s1566_s12 + $0x40] sm:$0xff] %vm885_vm2, %v847_v27  ;;  %v1092_v28 = vpop.f32.mrb[10].mxu1 }
 0x310   : > { %v862_v52 = vadd.f32 %v1092_v28, %v691_v25  ;;  %v856_v53 = vpop.f32.mrb[11].mxu1 }
 0x311   : > { %v857_v39 = vadd.f32 %v856_v53, %v691_v25 }
 0x312   : > { %897 = vst.msk [vmem:[%s1566_s12 + $0x58] sm:$0xff] %vm885_vm2, %v862_v52 }
 0x313   : > { %896 = vst.msk [vmem:[%s1566_s12 + $0x50] sm:$0xff] %vm885_vm2, %v857_v39  ;;  %v1095_v54 = vpop.f32.mrb[12].mxu1 }
 0x314   : > { %v872_v40 = vadd.f32 %v1095_v54, %v691_v25  ;;  %v866_v61 = vpop.f32.mrb[13].mxu1 }
 0x315   : > { %v867_v11 = vadd.f32 %v866_v61, %v691_v25 }
 0x316   : > { %899 = vst.msk [vmem:[%s1566_s12 + $0x68] sm:$0xff] %vm885_vm2, %v872_v40 }
 0x317   : > { %898 = vst.msk [vmem:[%s1566_s12 + $0x60] sm:$0xff] %vm885_vm2, %v867_v11  ;;  %v1098_v31 = vpop.f32.mrb[14].mxu1 }
 0x318   : > { %v882_v35 = vadd.f32 %v1098_v31, %v691_v25  ;;  %v876_v60 = vpop.f32.mrb[15].mxu1 }
 0x319   : > { %v877_v62 = vadd.f32 %v876_v60, %v691_v25 }
 0x31a   : > { %901 = vst.msk [vmem:[%s1566_s12 + $0x78] sm:$0xff] %vm885_vm2, %v882_v35 }
 0x31b   : > { %900 = vst.msk [vmem:[%s1566_s12 + $0x70] sm:$0xff] %vm885_vm2, %v877_v62 }
 0x31c PF: > { %s14_s15 = sadd.s32 1, %s1157_s15  }
 0x31d   : > { %p11_p4 = scmp.ge.s32.totalorder %s14_s15, 4  }
 0x31f   :  { %13 = sbr.rel (!%p11_p4) target bundleno = 1 (0x1), region = 66 }

</bundles_post_ra>
